<compile_context>
chip_gen: v6e
topology: v6e:2x2x1
jax: 0.10.0
libtpu: 0.0.40
codegen_flags: <defaults>
</compile_context>

<pallas_src>
import jax
import jax.numpy as jnp
from jax.experimental import pallas as pl
from jax.experimental.pallas import tpu as pltpu

LANE = 128                     # lane width of a vreg: lane-dense, unmasked stores
BYTES_PER_BUFFER = 4 << 20     # ~4 MiB per in/out tile; x4 (in+out, double-buffered) = 16 MiB


def _mish_factors(x_f32):
    """Returns (num, den) with tanh(softplus(x)) == num / den, overflow-safe."""
    e = jnp.exp(jnp.minimum(x_f32, 20.0))   # clamp: for x > 20, tanh(softplus(x)) == 1 in f32
    num = e * e + 2.0 * e
    return num, num + 2.0


def _mish_kernel(x_ref, o_ref):
    """Elementwise Mish on one (tb, LANE) tile; f32 math in-registers."""
    x = x_ref[...].astype(jnp.float32)
    num, den = _mish_factors(x)
    if jnp.dtype(o_ref.dtype).itemsize <= 2:
        # 16-bit output: hardware approx reciprocal is far below bf16 noise.
        t = num * pl.reciprocal(den, approx=True)
    else:
        # f32 output: exact divide (still one EUP push) to hold 1e-5 tolerance.
        t = num / den
    o_ref[...] = (x * t).astype(o_ref.dtype)


def _mish_jnp(x):
    """Tiny-tail / fallback path in plain jnp (same math as the kernel)."""
    xf = x.astype(jnp.float32)
    num, den = _mish_factors(xf)
    return (xf * (num / den)).astype(x.dtype)


def mish(x):
    """Mish(x) = x * tanh(softplus(x)); any shape, any float dtype."""
    orig_shape = x.shape
    dtype = x.dtype
    n = x.size
    flat = x.reshape(-1)

    itemsize = jnp.dtype(dtype).itemsize
    sub = 8 * max(1, 4 // itemsize)          # sublane packing: 8 (f32), 16 (bf16/f16)
    rows = n // LANE                         # lane-aligned prefix; tail handled outside

    if rows < sub:
        # Too small to be worth a kernel launch (< a couple KiB): pure jnp.
        return _mish_jnp(flat).reshape(orig_shape)

    # Byte-budgeted, sublane-aligned tile; capped at ceil(rows/2) so the grid
    # has >= 2 iterations (both v7x TensorCores busy).
    budget_rows = max(sub, (BYTES_PER_BUFFER // (LANE * itemsize)) // sub * sub)
    half_rows = -(-rows // 2)
    half_rows = -(-half_rows // sub) * sub
    tb = max(sub, min(budget_rows, half_rows))
    grid = (pl.cdiv(rows, tb),)              # last block may be ragged; Pallas masks it

    n_main = rows * LANE
    x2 = flat[:n_main].reshape(rows, LANE)

    out2 = pl.pallas_call(
        _mish_kernel,
        out_shape=jax.ShapeDtypeStruct((rows, LANE), dtype),
        grid_spec=pltpu.PrefetchScalarGridSpec(
            num_scalar_prefetch=0,
            grid=grid,
            in_specs=[pl.BlockSpec((tb, LANE), lambda i: (i, 0))],
            out_specs=pl.BlockSpec((tb, LANE), lambda i: (i, 0)),
        ),
        compiler_params=pltpu.CompilerParams(
            dimension_semantics=("parallel",),
            vmem_limit_bytes=32 << 20,       # v5e default scoped limit is 16 MiB
        ),
    )(x2)

    out_flat = out2.reshape(-1)
    if n_main < n:
        # Only the final n % 128 elements go through plain jnp.
        tail = _mish_jnp(flat[n_main:])
        out_flat = jnp.concatenate([out_flat, tail])
    return out_flat.reshape(orig_shape)


def _reference(x):
    """Pure-JAX reference of the PyTorch forward (x * tanh(softplus(x)))."""
    return x * jnp.tanh(jax.nn.softplus(x))


if __name__ == "__main__":
    # Small shape consistent with the module: batch=2, channels=4, 16x16 spatial.
    B, C, H, W = 2, 4, 16, 16
    key = jax.random.PRNGKey(0)
    x = jax.random.normal(key, (B, C, H, W), jnp.float32) * 3.0

    y = mish(x)
    jax.block_until_ready(y)

    ref = _reference(x)
    assert y.shape == x.shape and y.dtype == x.dtype
    assert jnp.allclose(y, ref, rtol=1e-5, atol=1e-5), (
        float(jnp.max(jnp.abs(y - ref))),
    )

    # Native-bf16 path (no host-side upcast; f32 math only in-kernel).
    xb = x.astype(jnp.bfloat16)
    yb = mish(xb)
    jax.block_until_ready(yb)
    assert yb.dtype == jnp.bfloat16
    assert jnp.allclose(yb.astype(jnp.float32),
                        _reference(xb.astype(jnp.float32)),
                        rtol=2e-2, atol=2e-2)

    # Non-lane-divisible shape: exercises the ragged last block + jnp tail.
    x_odd = jax.random.normal(jax.random.PRNGKey(0), (33, 100), jnp.float32) * 3.0
    y_odd = mish(x_odd)
    jax.block_until_ready(y_odd)
    assert y_odd.shape == x_odd.shape
    assert jnp.allclose(y_odd, _reference(x_odd), rtol=1e-5, atol=1e-5)

    print("KERNEL_OK")
</pallas_src>

<mosaic_0001>
module attributes {stable_mosaic.version = 11 : i64} {
  func.func @_mish_kernel(%arg0: i32, %arg1: memref<8x128xf32, #tpu.memory_space<vmem>>, %arg2: memref<8x128xf32, #tpu.memory_space<vmem>>) attributes {dimension_semantics = [#tpu.dimension_semantics<parallel>], iteration_bounds = array<i64: 2>, scalar_prefetch = 0 : i64, scratch_operands = 0 : i64, tpu.core_type = #tpu.core_type<tc>, window_params = [{transform_indices = @transform_0, window_bounds = array<i64: 8, 128>}, {transform_indices = @transform_1, window_bounds = array<i64: 8, 128>}]} {
    %c0 = arith.constant 0 : index
    %c0_0 = arith.constant 0 : index
    %0 = vector.load %arg1[%c0, %c0_0] : memref<8x128xf32, #tpu.memory_space<vmem>>, vector<8x128xf32>
    %cst = arith.constant 2.000000e+01 : f32
    %1 = vector.broadcast %cst : f32 to vector<8x128xf32>
    %2 = arith.minimumf %0, %1 : vector<8x128xf32>
    %3 = math.exp %2 : vector<8x128xf32>
    %4 = arith.mulf %3, %3 : vector<8x128xf32>
    %cst_1 = arith.constant 2.000000e+00 : f32
    %5 = vector.broadcast %cst_1 : f32 to vector<8x128xf32>
    %6 = arith.mulf %5, %3 : vector<8x128xf32>
    %7 = arith.addf %4, %6 : vector<8x128xf32>
    %cst_2 = arith.constant 2.000000e+00 : f32
    %8 = vector.broadcast %cst_2 : f32 to vector<8x128xf32>
    %9 = arith.addf %7, %8 : vector<8x128xf32>
    %10 = arith.divf %7, %9 : vector<8x128xf32>
    %11 = arith.mulf %0, %10 : vector<8x128xf32>
    %c0_3 = arith.constant 0 : index
    %c0_4 = arith.constant 0 : index
    %12 = vector.load %arg2[%c0_3, %c0_4] : memref<8x128xf32, #tpu.memory_space<vmem>>, vector<8x128xf32>
    tpu.vector_store %arg2[%c0_3, %c0_4], %11 {strides = array<i32>} : memref<8x128xf32, #tpu.memory_space<vmem>>, vector<8x128xf32>,
    return
  }
  func.func @transform_0(%arg0: i32) -> (i32, i32) {
    %c0_i32 = arith.constant 0 : i32
    %c0_i32_0 = arith.constant 0 : i32
    return %arg0, %c0_i32 : i32, i32
  }
  func.func @transform_1(%arg0: i32) -> (i32, i32) {
    %c0_i32 = arith.constant 0 : i32
    %c0_i32_0 = arith.constant 0 : i32
    return %arg0, %c0_i32 : i32, i32
  }
}

</mosaic_0001>

<bundles_post_ra>
// kernel: tpu_custom_call.1
= control target key start
LH: loop header
LB: loop body
LE: loop exit
PB: predicated region body
PF: predicated region fallthrough
CT: control target
= control target key end

     0   :  { %6 = vsyncpa [#allocation3], 0  ;;  %s537_s0 = inlined_call_operand.hbm [shape: f32[16,128], index: 0, kind: input, shape index: {}]   ;;  %s538_s1 = inlined_call_operand.hbm [shape: f32[16,128], index: 1, kind: output, shape index: {}]  }
   0x1   :  { %8 = vsyncpa [#allocation3 + $0x1], 0 }
   0x2   :  { %9 = vsyncpa [#allocation4], 0 }
   0x3   :  { %11 = vsyncpa [#allocation4 + $0x1], 0  ;;  %s396_s6 = smov 0   ;;  %s398_s7 = smov 0  }
   0x4   :  { %s400_s8 = smov 0   ;;  %s402_s9 = smov 0  }
   0x5 LB: > { %s417_s10 = sadd.s32 4294967295, %s382_s9   ;;  %s228_s11 = sadd.s32 4294967294, %s382_s9   ;;  %s382_s9 = sphi %s402_s9, %s555_s9   ;;  %s378_s8 = sphi %s400_s8, %s554_s8   ;;  %s374_s7 = sphi %s398_s7, %s553_s7   ;;  %s370_s6 = sphi %s396_s6, %s552_s6  }
   0x6   : > { %s421_s12 = sadd.s32 1, %s382_s9   ;;  %s24_s13 = sadd.s32 1, %s378_s8 }
   0x7   : > { %s21_s14 = ssub.s32 %s382_s9, %s421_s12  ;;  %p31_p0 = scmp.ne.s32.totalorder %s378_s8, %s374_s7 }
   0x8   : > { %p22_p1 = scmp.eq.s32.totalorder %s21_s14, 0  ;;  %p32_p2 = scmp.eq.s32.totalorder %s382_s9, 0 }
   0x9   : > { %p37_p3 = scmp.ne.s32.totalorder %s374_s7, %s370_s6  ;;  %p38_p4 = scmp.eq.s32.totalorder %s417_s10, 0 }
   0xa   : > { %s433_s15 = scalar_select %p22_p1, %s378_s8, %s24_s13  }
   0xb   : > { %p435_p5 = por %p32_p2, %p31_p0  ;;  %p439_p6 = por %p38_p4, %p37_p3 }
   0xc   : > { %p61_p7 = scmp.eq.s32.totalorder %s417_s10, 1  ;;  %p67_p8 = scmp.eq.s32.totalorder %s228_s11, 1 }
   0xd   : > { %s542_s17 = scalar_select %p439_p6, 1, 0 }
   0xe   : > { %p252_p10 = scmp.lt.s32.totalorder %s382_s9, 2  ;;  %p446_p11 = por %p61_p7, %p31_p0 }
   0xf   : > { %p450_p12 = por %p67_p8, %p37_p3  ;;  %s87_s20 = sand.u32 1, %s378_s8  }
  0x10   : > { %s543_s18 = scalar_select %p446_p11, 1, 0 }
  0x11   : > { %s544_s19 = scalar_select %p450_p12, 1, 0 }
  0x12   : > { %s232_s21 = sshll.u32 %s382_s9, 7  ;;  %s231_s22 = sshll.u32 %s87_s20, 3 }
  0x13   : > { %s459_s25 = scalar_lea.hbm %s537_s0, %s232_s21  ;;  %s91_s26 = scalar_lea.vmem [#allocation2], %s231_s22 }
  0x14   : > { %s98_s27 = sshll.u32 %s91_s26, 4  ;;  %p463_p13 = pnand %p252_p10, %p435_p5  ;;  %s467_s27 = int_to_ptr.vmem [resolvable:$true] %s98_s27 }
  0x15   : > { %s88_s29 = scalar_lea.sflag [#allocation3], %s87_s20  ;;  %s290_s30 = scalar_lea.hbm %s459_s25, 128 }
  0x16   : > { %p291_p2 = scmp.ne.s32.totalorder %s459_s25, %s290_s30  ;;  %p292_p3 = pneg %p463_p13 }
  0x17   : > { %s295_s4 = scalar_lea.hbm %s537_s0, 256  ;;  %p296_p5 = scmp.lt.s32.totalorder %s459_s25, %s537_s0 }
  0x18   : > { %p293_p4 = pnand %p292_p3, %p291_p2  ;;  %p297_p8 = scmp.lt.s32.totalorder %s295_s4, %s290_s30 }
  0x1a   : > { %p294_p7 = pneg %p293_p4  ;;  %p298_p10 = por %p297_p8, %p296_p5 }
  0x1c   : > { %p299_p9 = pnand %p298_p10, %p294_p7 }
  0x1e   : > { %302 = shalt.err (!%p299_p9)
}
  0x1f   : > { %s303_s13 = scalar_lea.vmem %s467_s27, 128  ;;  %s384_s14 = smov [#allocation2]  }
  0x20   : > { %p304_p0 = scmp.ne.s32.totalorder %s467_s27, %s303_s13  ;;  %s308_s16 = sshll.u32 %s384_s14, 4  ;;  %s309_s16 = int_to_ptr.vmem [resolvable:$false] %s308_s16 }
  0x21   : > { %s310_s20 = scalar_lea.vmem %s309_s16, 256  ;;  %p311_p4 = scmp.lt.s32.totalorder %s467_s27, %s309_s16 }
  0x22   : > { %p306_p1 = pnand %p304_p0, %p292_p3  ;;  %p312_p12 = scmp.lt.s32.totalorder %s310_s20, %s303_s13 }
  0x24   : > { %p307_p2 = pneg %p306_p1  ;;  %p313_p11 = por %p312_p12, %p311_p4 }
  0x26   : > { %p314_p6 = pnand %p313_p11, %p307_p2 }
  0x28   : > { %317 = shalt.err (!%p314_p6)
}
  0x29   : > { %247 = dma.hbm_to_vmem [thread:$0]  (!%p463_p13), %s459_s25, 128, %s467_s27, %s88_s29  }
  0x2a   : > { %p546_p9 = scmp.lt.s32.totalorder %s382_s9, 3  ;;  %p547_p7 = scmp.ge.s32.totalorder %s382_s9, 1 }
  0x2c   : > { %p104_p0 = pnand %p547_p7, %p546_p9 }
  0x2d   : > { %s494_s21 = sand.u32 (!%p104_p0), 1, %s374_s7   ;;  %p548_p6 = scmp.ne.s32.totalorder (!%p104_p0), %s542_s17, 0 }
  0x2e   : > { %107 = sbr.rel (%p104_p0) target bundleno = 108 (0x6c), region = 24  ;;  %s234_s22 = sshll.u32 (!%p104_p0), %s494_s21, 3 }
  0x2f   : > { %s110_s23 = scalar_lea.sflag (!%p104_p0), [#allocation3], %s494_s21  ;;  %s113_s24 = scalar_lea.vmem (!%p104_p0), [#allocation2], %s234_s22 }
  0x33   : > { %361 = dma.done.wait (%p548_p6), %s110_s23, 128  }
  0x34   : > { %363 = vsyncadd (%p548_p6), %s110_s23, 4294967168  ;;  %v132_v0 = vld [vmem:[%s113_s24] sm:$0xff]  ;;  %s131_s25 = scalar_lea.vmem [#allocation5], %s234_s22  ;;  %s237_s27 = sshll.u32 %s417_s10, 7 }
  0x35   : > { %v133_v1 = vmin.f32 %v132_v0, 20.0  ;;  %s158_s26 = sshll.u32 %s131_s25, 4  ;;  %s156_s29 = scalar_lea.hbm %s538_s1, %s237_s27  ;;  %s159_s26 = int_to_ptr.vmem [resolvable:$true] %s158_s26 }
  0x36   : > { %s145_s30 = scalar_lea.sflag [#allocation4], %s494_s21  ;;  %s318_s2 = scalar_lea.vmem %s159_s26, 128 }
  0x37   : > { %v134_v2 = vmul.f32 1.442695, %v133_v1  ;;  %p319_p11 = scmp.ne.s32.totalorder %s159_s26, %s318_s2  ;;  %p549_p12 = scmp.ne.s32.totalorder %s543_s18, 0 }
  0x38   : > { %s385_s3 = smov [#allocation5]  }
  0x39   : > { %286 = vpow2.f32 %v134_v2  ;;  %p320_p13 = pnand %p319_p11, %p549_p12  ;;  %s322_s4 = sshll.u32 %s385_s3, 4  ;;  %s323_s4 = int_to_ptr.vmem [resolvable:$false] %s322_s4 }
  0x3a   : > { %s324_s5 = scalar_lea.vmem %s323_s4, 256  ;;  %p325_p3 = scmp.lt.s32.totalorder %s159_s26, %s323_s4 }
  0x3b   : > { %p321_p1 = pneg %p320_p13  ;;  %p326_p5 = scmp.lt.s32.totalorder %s324_s5, %s318_s2 }
  0x3d   : > { %p327_p8 = por %p326_p5, %p325_p3 }
  0x3f   : > { %p328_p10 = pnand %p327_p8, %p321_p1 }
  0x46   : > { %v287_v3 = vpop.eup %286 }
  0x47   : > { %v136_v4 = vmul.f32 %v287_v3, %v287_v3  ;;  %v137_v5 = vmul.f32 2.0, %v287_v3 }
  0x49   : > { %v138_v6 = vadd.f32 %v137_v5, %v136_v4 }
  0x4b   : > { %v139_v7 = vadd.f32 2.0, %v138_v6 }
  0x4d   : > { %288 = vrcp.f32 %v139_v7 }
  0x5a   : > { %v289_v8 = vpop.eup %288 }
  0x5b   : > { %v141_v9 = vmul.f32 %v289_v8, %v138_v6 }
  0x5d   : > { %v142_v10 = vmul.f32 %v141_v9, %v132_v0 }
  0x5f   : > { %143 = vst [vmem:[%s131_s25] sm:$0xff] %v142_v10 }
  0x60   : > { %331 = shalt.err (!%p328_p10)
}
  0x61   : > { %s332_s10 = scalar_lea.hbm %s156_s29, 128  ;;  %s336_s14 = scalar_lea.hbm %s538_s1, 256 }
  0x62   : > { %p333_p2 = scmp.ne.s32.totalorder %s156_s29, %s332_s10  ;;  %p337_p7 = scmp.lt.s32.totalorder %s156_s29, %s538_s1 }
  0x63   : > { %p338_p0 = scmp.lt.s32.totalorder %s336_s14, %s332_s10 }
  0x64   : > { %p334_p4 = pnand %p333_p2, %p549_p12 }
  0x65   : > { %p339_p6 = por %p338_p0, %p337_p7 }
  0x66   : > { %p335_p9 = pneg %p334_p4 }
  0x68   : > { %p340_p11 = pnand %p339_p6, %p335_p9 }
  0x6a   : > { %343 = shalt.err (!%p340_p11)
}
  0x6b   : > { %242 = dma.vmem_to_hbm [thread:$0]  (%p549_p12), %s159_s26, 128, %s156_s29, %s145_s30  }
  0x6c PF: > { %s170_s21 = sand.u32 1, %s370_s6   ;;  %p550_p13 = scmp.ne.s32.totalorder %s544_s19, 0 }
  0x6d   : > { %p551_p1 = scmp.ge.s32.totalorder %s382_s9, 2  ;;  %s171_s22 = scalar_lea.sflag [#allocation4], %s170_s21 }
  0x6f   : > { %p249_p3 = pnand %p551_p1, %p550_p13 }
  0x71   : > { %p250_p5 = pneg %p249_p3 }
  0x73   : > { %365 = dma.done.wait (%p250_p5), %s171_s22, 128  }
  0x74   : > { %367 = vsyncadd (%p250_p5), %s171_s22, 4294967168  ;;  %p14_p8 = scmp.ge.s32.totalorder %s421_s12, 4   ;;  %s552_s6 = smov %s374_s7 }
  0x75   : > { %s553_s7 = smov %s378_s8  ;;  %s554_s8 = smov %s433_s15 }
  0x76   : > { %s555_s9 = smov %s421_s12  ;;  %16 = sbr.rel (!%p14_p8) target bundleno = 5 (0x5), region = 69 }
  0x7b   :  { %176 = vsyncpa [#allocation3], 1 }
  0x7c   :  { %178 = vsyncpa [#allocation3 + $0x1], 1 }
  0x7d   :  { %179 = vsyncpa [#allocation4], 1 }
  0x7e   :  { %181 = vsyncpa [#allocation4 + $0x1], 1 }

</bundles_post_ra>
